<compile_context>
chip_gen: v7x
topology: tpu7x:2x2x1
jax: 0.10.0
libtpu: 0.0.40
codegen_flags: <defaults>
</compile_context>

<pallas_src>
import math
from typing import Dict, List, Tuple

import jax
import jax.numpy as jnp
from jax.experimental import pallas as pl
from jax.experimental.pallas import tpu as pltpu


def _cdiv(a: int, b: int) -> int:
    return -(-a // b)


def _round_up(a: int, b: int) -> int:
    return _cdiv(a, b) * b


def _tpu_tuning() -> Tuple[int, int, int]:
    """Best-effort (block_budget_bytes, vmem_limit_bytes, num_tensorcores)."""
    vmem = None
    cores = 1
    try:
        info = pltpu.get_tpu_info()
        vmem = int(info.vmem_capacity_bytes)
        for attr in ("num_cores", "core_count", "num_tensor_cores"):
            if hasattr(info, attr):
                cores = max(cores, int(getattr(info, attr)))
                break
    except Exception:
        pass
    if vmem is not None and vmem >= 128 * 1024 * 1024:
        # v5e / v6e: 128 MiB physical VMEM, single TensorCore.
        return 8 * 1024 * 1024, 64 * 1024 * 1024, cores
    if vmem is not None:
        # v7x-class: 64 MiB physical VMEM, 2 TensorCores per chip.
        return 4 * 1024 * 1024, 48 * 1024 * 1024, max(cores, 2)
    # Unknown chip: size for the smallest VMEM and assume a single core.
    return 4 * 1024 * 1024, 48 * 1024 * 1024, cores


def _make_pool_kernel(r_blk: int, tile_p: int, acc_w: int, p_total: int):
    """Streaming sum-pool: accumulates acc_w-wide lane partials into the output block."""
    n_chunks = tile_p // acc_w
    ragged = (p_total % tile_p) != 0

    def kernel(x_ref, out_ref):
        j = pl.program_id(1)

        @pl.when(j == 0)
        def _init():
            out_ref[...] = jnp.zeros_like(out_ref)

        def accumulate(mask_tail: bool):
            for t in range(n_chunks):                          # bounded static unroll (<= 16)
                c = x_ref[:, t * acc_w:(t + 1) * acc_w].astype(jnp.float32)
                if mask_tail:
                    lane = jax.lax.broadcasted_iota(jnp.int32, (r_blk, acc_w), 1)
                    valid = (j * tile_p + t * acc_w + lane) < p_total
                    c = jnp.where(valid, c, 0.0)
                out_ref[...] += c

        if ragged:
            last = pl.num_programs(1) - 1

            @pl.when(j != last)
            def _body():
                accumulate(False)

            @pl.when(j == last)
            def _tail():
                accumulate(True)
        else:
            accumulate(False)

    return kernel


def _make_epilogue_kernel(T: float, n_batch: int, inv_p: float):
    """Lane-reduce pooled partials, Linear(C,K), log_softmax/softmax, KL -> (1,1)."""
    inv_T = 1.0 / float(T)
    t2_over_n = float(T) * float(T) / float(n_batch)

    def kernel(part_ref, wt_ref, b_ref, tgt_ref, out_ref):
        pooled = jnp.sum(part_ref[...], axis=-1) * inv_p                # (N, C) avg pool
        wt = wt_ref[...].astype(jnp.float32)                            # (C, K)
        b = b_ref[...].astype(jnp.float32)                              # (1, K)
        pred = jnp.dot(pooled, wt, preferred_element_type=jnp.float32) + b   # (N, K)

        ls = pred * inv_T                                               # student logits / T
        lt = tgt_ref[...].astype(jnp.float32) * inv_T                   # teacher logits / T

        ls_max = jnp.max(ls, axis=-1, keepdims=True)
        ls_sh = ls - ls_max
        log_ps = ls_sh - jnp.log(jnp.sum(jnp.exp(ls_sh), axis=-1, keepdims=True))

        lt_max = jnp.max(lt, axis=-1, keepdims=True)
        lt_sh = lt - lt_max
        log_pt = lt_sh - jnp.log(jnp.sum(jnp.exp(lt_sh), axis=-1, keepdims=True))
        pt = jnp.exp(log_pt)

        elt = pt * (log_pt - log_ps)                                    # (N, K)
        tot = jnp.sum(jnp.sum(elt, axis=-1, keepdims=True), axis=0, keepdims=True)
        out_ref[...] = tot * t2_over_n                                  # batchmean * T^2

    return kernel


def _pooled_distill_kl_loss(feat, w, b, target, T, *, block_budget_bytes: int,
                            vmem_limit_bytes: int, num_cores: int):
    """One mid layer: FeatureClassify(feat) then DistillKL(T) vs target."""
    N, C, H, W = feat.shape
    K = w.shape[0]
    P = H * W
    R = N * C
    itemsize = feat.dtype.itemsize
    x = feat.reshape(R, P)                         # free view, native dtype, no pad

    # ---- row block: pack N*C into sublanes; split across TCs / cap to budget ----
    r_cap = max(8, ((block_budget_bytes // (128 * itemsize)) // 8) * 8)
    if R <= 8:
        r_blk = R
    else:
        r_pad8 = _round_up(R, 8)
        if num_cores > 1 and R >= 8 * num_cores:
            r_target = _round_up(_cdiv(R, num_cores), 8)   # >=1 row block per core
        else:
            r_target = r_pad8                              # single row block if it fits
        r_blk = max(8, min(r_target, r_cap, r_pad8))
    n_r = _cdiv(R, r_blk)

    # ---- lane tile: large VMEM-budgeted block, accumulated as acc_w-wide partials ----
    p_pad128 = _round_up(P, 128)
    budget_lanes = max(128, ((block_budget_bytes // (r_blk * itemsize)) // 128) * 128)
    tile_p_raw = max(128, min(budget_lanes, p_pad128))
    n_groups = tile_p_raw // 128
    n_chunks = min(16, n_groups)                   # bounded static unroll per grid step
    acc_w = 128 * (n_groups // n_chunks)           # partial-sum width (>= 128 lanes)
    tile_p = acc_w * n_chunks                      # multiple of 128, within budget
    n_p = _cdiv(P, tile_p)

    pool_kernel = _make_pool_kernel(r_blk, tile_p, acc_w, P)
    partials = pl.pallas_call(
        pool_kernel,
        out_shape=jax.ShapeDtypeStruct((R, acc_w), jnp.float32),
        grid_spec=pltpu.PrefetchScalarGridSpec(
            num_scalar_prefetch=0,
            grid=(n_r, n_p),
            in_specs=[pl.BlockSpec((r_blk, tile_p), lambda i, j: (i, j))],
            out_specs=pl.BlockSpec((r_blk, acc_w), lambda i, j: (i, 0)),
        ),
        compiler_params=pltpu.CompilerParams(
            dimension_semantics=("parallel", "arbitrary"),
            vmem_limit_bytes=vmem_limit_bytes,
        ),
    )(x)

    # ---- tiny epilogue kernel: Linear + softmaxes + KL -> scalar ----
    wt = jnp.transpose(w)                          # (C, K), tiny wrapper transpose
    b2 = b.reshape(1, K)
    epi_kernel = _make_epilogue_kernel(float(T), N, 1.0 / float(P))
    out = pl.pallas_call(
        epi_kernel,
        out_shape=jax.ShapeDtypeStruct((1, 1), jnp.float32),
        grid_spec=pltpu.PrefetchScalarGridSpec(
            num_scalar_prefetch=0,
            grid=(1,),
            in_specs=[
                pl.BlockSpec((N, C, acc_w), lambda i: (0, 0, 0)),   # pooled partial sums
                pl.BlockSpec((C, K), lambda i: (0, 0)),             # linear weight^T
                pl.BlockSpec((1, K), lambda i: (0, 0)),             # linear bias
                pl.BlockSpec((N, K), lambda i: (0, 0)),             # teacher logits
            ],
            out_specs=pl.BlockSpec((1, 1), lambda i: (0, 0)),
        ),
        compiler_params=pltpu.CompilerParams(
            dimension_semantics=("arbitrary",),
        ),
    )(partials.reshape(N, C, acc_w), wt, b2, target)
    return out[0, 0]


class MidClsLossPallas:
    """Pallas equivalent of MidClsLoss (FeatureClassify + DistillKL per mid layer)."""
    # TODO(synk): the PyTorch module's logging.getLogger warnings in __init__ are
    # non-compute and are not reproduced.

    def __init__(self, num_classes: int, mid_layer_T: Dict[str, float],
                 feat_s: List[jax.Array], key):
        self.num_classes = num_classes
        self.mid_layer_T = dict(mid_layer_T)
        budget, vmem_limit, cores = _tpu_tuning()
        self.block_budget_bytes = budget
        self.vmem_limit_bytes = vmem_limit
        self.num_cores = cores
        self.params: Dict[str, Tuple[jax.Array, jax.Array]] = {}
        for i, name in enumerate(self.mid_layer_T.keys()):
            idx = int(name[-1])
            C = feat_s[idx].shape[1]
            kw, kb = jax.random.split(jax.random.fold_in(key, i))
            bound = 1.0 / math.sqrt(C)                 # nn.Linear default init range
            w = jax.random.uniform(kw, (num_classes, C), jnp.float32, -bound, bound)
            b = jax.random.uniform(kb, (num_classes,), jnp.float32, -bound, bound)
            self.params[name] = (w, b)

    def __call__(self, feat_s: List[jax.Array], target: jax.Array) -> jax.Array:
        total = jnp.zeros((), jnp.float32)
        for name, T in self.mid_layer_T.items():
            idx = int(name[-1])
            w, b = self.params[name]
            total = total + _pooled_distill_kl_loss(
                feat_s[idx], w, b, target, T,
                block_budget_bytes=self.block_budget_bytes,
                vmem_limit_bytes=self.vmem_limit_bytes,
                num_cores=self.num_cores)
        return total


def _reference_mid_cls_loss(feat_s, target, params, mid_layer_T):
    """Pure-JAX reference matching the PyTorch forward semantics."""
    total = jnp.zeros((), jnp.float32)
    for name, T in mid_layer_T.items():
        idx = int(name[-1])
        w, b = params[name]
        f = feat_s[idx].astype(jnp.float32)
        N = f.shape[0]
        pooled = jnp.mean(f, axis=(2, 3))                              # AdaptiveAvgPool2d(1)+squeeze
        pred = pooled @ w.T + b                                        # Linear
        log_ps = jax.nn.log_softmax(pred / T, axis=1)
        pt = jax.nn.softmax(target / T, axis=1)
        log_pt = jax.nn.log_softmax(target / T, axis=1)
        kl = jnp.sum(pt * (log_pt - log_ps)) / N * (T ** 2)            # kl_div batchmean * T^2
        total = total + kl
    return total


if __name__ == "__main__":
    key = jax.random.PRNGKey(0)
    N, K = 2, 10

    # Student mid-layer features; layers 2 and 3 are the supervised ones.
    feat_shapes = [(N, 4, 8, 8), (N, 4, 8, 8), (N, 8, 64, 64), (N, 16, 10, 10)]
    mid_layer_T = {"layer2": 4.0, "layer3": 2.0}

    keys = jax.random.split(key, len(feat_shapes) + 2)
    feat_s = [jax.random.normal(keys[i], s, jnp.float32) for i, s in enumerate(feat_shapes)]
    target = 3.0 * jax.random.normal(keys[len(feat_shapes)], (N, K), jnp.float32)

    loss_mod = MidClsLossPallas(num_classes=K, mid_layer_T=mid_layer_T,
                                feat_s=feat_s, key=keys[len(feat_shapes) + 1])

    loss = jax.block_until_ready(loss_mod(feat_s, target))
    ref = jax.block_until_ready(
        _reference_mid_cls_loss(feat_s, target, loss_mod.params, mid_layer_T))

    assert jnp.isfinite(loss), loss
    assert jnp.allclose(loss, ref, rtol=1e-4, atol=1e-5), (loss, ref)

    print("KERNEL_OK")
</pallas_src>

<mosaic_0001>
module attributes {stable_mosaic.version = 11 : i64} {
  func.func @kernel(%arg0: i32, %arg1: i32, %arg2: memref<16x4096xf32, #tpu.memory_space<vmem>>, %arg3: memref<16x256xf32, #tpu.memory_space<vmem>>) attributes {dimension_semantics = [#tpu.dimension_semantics<parallel>, #tpu.dimension_semantics<arbitrary>], iteration_bounds = array<i64: 1, 1>, scalar_prefetch = 0 : i64, scratch_operands = 0 : i64, tpu.core_type = #tpu.core_type<tc>, window_params = [{transform_indices = @transform_0, window_bounds = array<i64: 16, 4096>}, {transform_indices = @transform_1, window_bounds = array<i64: 16, 256>}]} {
    %c0_i32 = arith.constant 0 : i32
    %0 = arith.cmpi eq, %arg1, %c0_i32 : i32
    %1 = arith.extui %0 : i1 to i32
    %c0_i32_0 = arith.constant 0 : i32
    %2 = arith.cmpi ne, %1, %c0_i32_0 : i32
    scf.if %2 {
      %cst = arith.constant 0.000000e+00 : f32
      %67 = vector.broadcast %cst : f32 to vector<16x256xf32>
      %c0_81 = arith.constant 0 : index
      %c0_82 = arith.constant 0 : index
      %68 = vector.load %arg3[%c0_81, %c0_82] : memref<16x256xf32, #tpu.memory_space<vmem>>, vector<16x256xf32>
      tpu.vector_store %arg3[%c0_81, %c0_82], %67 {strides = array<i32>} : memref<16x256xf32, #tpu.memory_space<vmem>>, vector<16x256xf32>,
    } else {
    }
    %c0 = arith.constant 0 : index
    %c0_1 = arith.constant 0 : index
    %3 = vector.load %arg2[%c0, %c0_1] : memref<16x4096xf32, #tpu.memory_space<vmem>>, vector<16x256xf32>
    %c0_2 = arith.constant 0 : index
    %c0_3 = arith.constant 0 : index
    %4 = vector.load %arg3[%c0_2, %c0_3] : memref<16x256xf32, #tpu.memory_space<vmem>>, vector<16x256xf32>
    %5 = arith.addf %4, %3 : vector<16x256xf32>
    %c0_4 = arith.constant 0 : index
    %c0_5 = arith.constant 0 : index
    %6 = vector.load %arg3[%c0_4, %c0_5] : memref<16x256xf32, #tpu.memory_space<vmem>>, vector<16x256xf32>
    tpu.vector_store %arg3[%c0_4, %c0_5], %5 {strides = array<i32>} : memref<16x256xf32, #tpu.memory_space<vmem>>, vector<16x256xf32>,
    %c0_6 = arith.constant 0 : index
    %c256 = arith.constant 256 : index
    %7 = vector.load %arg2[%c0_6, %c256] : memref<16x4096xf32, #tpu.memory_space<vmem>>, vector<16x256xf32>
    %c0_7 = arith.constant 0 : index
    %c0_8 = arith.constant 0 : index
    %8 = vector.load %arg3[%c0_7, %c0_8] : memref<16x256xf32, #tpu.memory_space<vmem>>, vector<16x256xf32>
    %9 = arith.addf %8, %7 : vector<16x256xf32>
    %c0_9 = arith.constant 0 : index
    %c0_10 = arith.constant 0 : index
    %10 = vector.load %arg3[%c0_9, %c0_10] : memref<16x256xf32, #tpu.memory_space<vmem>>, vector<16x256xf32>
    tpu.vector_store %arg3[%c0_9, %c0_10], %9 {strides = array<i32>} : memref<16x256xf32, #tpu.memory_space<vmem>>, vector<16x256xf32>,
    %c0_11 = arith.constant 0 : index
    %c512 = arith.constant 512 : index
    %11 = vector.load %arg2[%c0_11, %c512] : memref<16x4096xf32, #tpu.memory_space<vmem>>, vector<16x256xf32>
    %c0_12 = arith.constant 0 : index
    %c0_13 = arith.constant 0 : index
    %12 = vector.load %arg3[%c0_12, %c0_13] : memref<16x256xf32, #tpu.memory_space<vmem>>, vector<16x256xf32>
    %13 = arith.addf %12, %11 : vector<16x256xf32>
    %c0_14 = arith.constant 0 : index
    %c0_15 = arith.constant 0 : index
    %14 = vector.load %arg3[%c0_14, %c0_15] : memref<16x256xf32, #tpu.memory_space<vmem>>, vector<16x256xf32>
    tpu.vector_store %arg3[%c0_14, %c0_15], %13 {strides = array<i32>} : memref<16x256xf32, #tpu.memory_space<vmem>>, vector<16x256xf32>,
    %c0_16 = arith.constant 0 : index
    %c768 = arith.constant 768 : index
    %15 = vector.load %arg2[%c0_16, %c768] : memref<16x4096xf32, #tpu.memory_space<vmem>>, vector<16x256xf32>
    %c0_17 = arith.constant 0 : index
    %c0_18 = arith.constant 0 : index
    %16 = vector.load %arg3[%c0_17, %c0_18] : memref<16x256xf32, #tpu.memory_space<vmem>>, vector<16x256xf32>
    %17 = arith.addf %16, %15 : vector<16x256xf32>
    %c0_19 = arith.constant 0 : index
    %c0_20 = arith.constant 0 : index
    %18 = vector.load %arg3[%c0_19, %c0_20] : memref<16x256xf32, #tpu.memory_space<vmem>>, vector<16x256xf32>
    tpu.vector_store %arg3[%c0_19, %c0_20], %17 {strides = array<i32>} : memref<16x256xf32, #tpu.memory_space<vmem>>, vector<16x256xf32>,
    %c0_21 = arith.constant 0 : index
    %c1024 = arith.constant 1024 : index
    %19 = vector.load %arg2[%c0_21, %c1024] : memref<16x4096xf32, #tpu.memory_space<vmem>>, vector<16x256xf32>
    %c0_22 = arith.constant 0 : index
    %c0_23 = arith.constant 0 : index
    %20 = vector.load %arg3[%c0_22, %c0_23] : memref<16x256xf32, #tpu.memory_space<vmem>>, vector<16x256xf32>
    %21 = arith.addf %20, %19 : vector<16x256xf32>
    %c0_24 = arith.constant 0 : index
    %c0_25 = arith.constant 0 : index
    %22 = vector.load %arg3[%c0_24, %c0_25] : memref<16x256xf32, #tpu.memory_space<vmem>>, vector<16x256xf32>
    tpu.vector_store %arg3[%c0_24, %c0_25], %21 {strides = array<i32>} : memref<16x256xf32, #tpu.memory_space<vmem>>, vector<16x256xf32>,
    %c0_26 = arith.constant 0 : index
    %c1280 = arith.constant 1280 : index
    %23 = vector.load %arg2[%c0_26, %c1280] : memref<16x4096xf32, #tpu.memory_space<vmem>>, vector<16x256xf32>
    %c0_27 = arith.constant 0 : index
    %c0_28 = arith.constant 0 : index
    %24 = vector.load %arg3[%c0_27, %c0_28] : memref<16x256xf32, #tpu.memory_space<vmem>>, vector<16x256xf32>
    %25 = arith.addf %24, %23 : vector<16x256xf32>
    %c0_29 = arith.constant 0 : index
    %c0_30 = arith.constant 0 : index
    %26 = vector.load %arg3[%c0_29, %c0_30] : memref<16x256xf32, #tpu.memory_space<vmem>>, vector<16x256xf32>
    tpu.vector_store %arg3[%c0_29, %c0_30], %25 {strides = array<i32>} : memref<16x256xf32, #tpu.memory_space<vmem>>, vector<16x256xf32>,
    %c0_31 = arith.constant 0 : index
    %c1536 = arith.constant 1536 : index
    %27 = vector.load %arg2[%c0_31, %c1536] : memref<16x4096xf32, #tpu.memory_space<vmem>>, vector<16x256xf32>
    %c0_32 = arith.constant 0 : index
    %c0_33 = arith.constant 0 : index
    %28 = vector.load %arg3[%c0_32, %c0_33] : memref<16x256xf32, #tpu.memory_space<vmem>>, vector<16x256xf32>
    %29 = arith.addf %28, %27 : vector<16x256xf32>
    %c0_34 = arith.constant 0 : index
    %c0_35 = arith.constant 0 : index
    %30 = vector.load %arg3[%c0_34, %c0_35] : memref<16x256xf32, #tpu.memory_space<vmem>>, vector<16x256xf32>
    tpu.vector_store %arg3[%c0_34, %c0_35], %29 {strides = array<i32>} : memref<16x256xf32, #tpu.memory_space<vmem>>, vector<16x256xf32>,
    %c0_36 = arith.constant 0 : index
    %c1792 = arith.constant 1792 : index
    %31 = vector.load %arg2[%c0_36, %c1792] : memref<16x4096xf32, #tpu.memory_space<vmem>>, vector<16x256xf32>
    %c0_37 = arith.constant 0 : index
    %c0_38 = arith.constant 0 : index
    %32 = vector.load %arg3[%c0_37, %c0_38] : memref<16x256xf32, #tpu.memory_space<vmem>>, vector<16x256xf32>
    %33 = arith.addf %32, %31 : vector<16x256xf32>
    %c0_39 = arith.constant 0 : index
    %c0_40 = arith.constant 0 : index
    %34 = vector.load %arg3[%c0_39, %c0_40] : memref<16x256xf32, #tpu.memory_space<vmem>>, vector<16x256xf32>
    tpu.vector_store %arg3[%c0_39, %c0_40], %33 {strides = array<i32>} : memref<16x256xf32, #tpu.memory_space<vmem>>, vector<16x256xf32>,
    %c0_41 = arith.constant 0 : index
    %c2048 = arith.constant 2048 : index
    %35 = vector.load %arg2[%c0_41, %c2048] : memref<16x4096xf32, #tpu.memory_space<vmem>>, vector<16x256xf32>
    %c0_42 = arith.constant 0 : index
    %c0_43 = arith.constant 0 : index
    %36 = vector.load %arg3[%c0_42, %c0_43] : memref<16x256xf32, #tpu.memory_space<vmem>>, vector<16x256xf32>
    %37 = arith.addf %36, %35 : vector<16x256xf32>
    %c0_44 = arith.constant 0 : index
    %c0_45 = arith.constant 0 : index
    %38 = vector.load %arg3[%c0_44, %c0_45] : memref<16x256xf32, #tpu.memory_space<vmem>>, vector<16x256xf32>
    tpu.vector_store %arg3[%c0_44, %c0_45], %37 {strides = array<i32>} : memref<16x256xf32, #tpu.memory_space<vmem>>, vector<16x256xf32>,
    %c0_46 = arith.constant 0 : index
    %c2304 = arith.constant 2304 : index
    %39 = vector.load %arg2[%c0_46, %c2304] : memref<16x4096xf32, #tpu.memory_space<vmem>>, vector<16x256xf32>
    %c0_47 = arith.constant 0 : index
    %c0_48 = arith.constant 0 : index
    %40 = vector.load %arg3[%c0_47, %c0_48] : memref<16x256xf32, #tpu.memory_space<vmem>>, vector<16x256xf32>
    %41 = arith.addf %40, %39 : vector<16x256xf32>
    %c0_49 = arith.constant 0 : index
    %c0_50 = arith.constant 0 : index
    %42 = vector.load %arg3[%c0_49, %c0_50] : memref<16x256xf32, #tpu.memory_space<vmem>>, vector<16x256xf32>
    tpu.vector_store %arg3[%c0_49, %c0_50], %41 {strides = array<i32>} : memref<16x256xf32, #tpu.memory_space<vmem>>, vector<16x256xf32>,
    %c0_51 = arith.constant 0 : index
    %c2560 = arith.constant 2560 : index
    %43 = vector.load %arg2[%c0_51, %c2560] : memref<16x4096xf32, #tpu.memory_space<vmem>>, vector<16x256xf32>
    %c0_52 = arith.constant 0 : index
    %c0_53 = arith.constant 0 : index
    %44 = vector.load %arg3[%c0_52, %c0_53] : memref<16x256xf32, #tpu.memory_space<vmem>>, vector<16x256xf32>
    %45 = arith.addf %44, %43 : vector<16x256xf32>
    %c0_54 = arith.constant 0 : index
    %c0_55 = arith.constant 0 : index
    %46 = vector.load %arg3[%c0_54, %c0_55] : memref<16x256xf32, #tpu.memory_space<vmem>>, vector<16x256xf32>
    tpu.vector_store %arg3[%c0_54, %c0_55], %45 {strides = array<i32>} : memref<16x256xf32, #tpu.memory_space<vmem>>, vector<16x256xf32>,
    %c0_56 = arith.constant 0 : index
    %c2816 = arith.constant 2816 : index
    %47 = vector.load %arg2[%c0_56, %c2816] : memref<16x4096xf32, #tpu.memory_space<vmem>>, vector<16x256xf32>
    %c0_57 = arith.constant 0 : index
    %c0_58 = arith.constant 0 : index
    %48 = vector.load %arg3[%c0_57, %c0_58] : memref<16x256xf32, #tpu.memory_space<vmem>>, vector<16x256xf32>
    %49 = arith.addf %48, %47 : vector<16x256xf32>
    %c0_59 = arith.constant 0 : index
    %c0_60 = arith.constant 0 : index
    %50 = vector.load %arg3[%c0_59, %c0_60] : memref<16x256xf32, #tpu.memory_space<vmem>>, vector<16x256xf32>
    tpu.vector_store %arg3[%c0_59, %c0_60], %49 {strides = array<i32>} : memref<16x256xf32, #tpu.memory_space<vmem>>, vector<16x256xf32>,
    %c0_61 = arith.constant 0 : index
    %c3072 = arith.constant 3072 : index
    %51 = vector.load %arg2[%c0_61, %c3072] : memref<16x4096xf32, #tpu.memory_space<vmem>>, vector<16x256xf32>
    %c0_62 = arith.constant 0 : index
    %c0_63 = arith.constant 0 : index
    %52 = vector.load %arg3[%c0_62, %c0_63] : memref<16x256xf32, #tpu.memory_space<vmem>>, vector<16x256xf32>
    %53 = arith.addf %52, %51 : vector<16x256xf32>
    %c0_64 = arith.constant 0 : index
    %c0_65 = arith.constant 0 : index
    %54 = vector.load %arg3[%c0_64, %c0_65] : memref<16x256xf32, #tpu.memory_space<vmem>>, vector<16x256xf32>
    tpu.vector_store %arg3[%c0_64, %c0_65], %53 {strides = array<i32>} : memref<16x256xf32, #tpu.memory_space<vmem>>, vector<16x256xf32>,
    %c0_66 = arith.constant 0 : index
    %c3328 = arith.constant 3328 : index
    %55 = vector.load %arg2[%c0_66, %c3328] : memref<16x4096xf32, #tpu.memory_space<vmem>>, vector<16x256xf32>
    %c0_67 = arith.constant 0 : index
    %c0_68 = arith.constant 0 : index
    %56 = vector.load %arg3[%c0_67, %c0_68] : memref<16x256xf32, #tpu.memory_space<vmem>>, vector<16x256xf32>
    %57 = arith.addf %56, %55 : vector<16x256xf32>
    %c0_69 = arith.constant 0 : index
    %c0_70 = arith.constant 0 : index
    %58 = vector.load %arg3[%c0_69, %c0_70] : memref<16x256xf32, #tpu.memory_space<vmem>>, vector<16x256xf32>
    tpu.vector_store %arg3[%c0_69, %c0_70], %57 {strides = array<i32>} : memref<16x256xf32, #tpu.memory_space<vmem>>, vector<16x256xf32>,
    %c0_71 = arith.constant 0 : index
    %c3584 = arith.constant 3584 : index
    %59 = vector.load %arg2[%c0_71, %c3584] : memref<16x4096xf32, #tpu.memory_space<vmem>>, vector<16x256xf32>
    %c0_72 = arith.constant 0 : index
    %c0_73 = arith.constant 0 : index
    %60 = vector.load %arg3[%c0_72, %c0_73] : memref<16x256xf32, #tpu.memory_space<vmem>>, vector<16x256xf32>
    %61 = arith.addf %60, %59 : vector<16x256xf32>
    %c0_74 = arith.constant 0 : index
    %c0_75 = arith.constant 0 : index
    %62 = vector.load %arg3[%c0_74, %c0_75] : memref<16x256xf32, #tpu.memory_space<vmem>>, vector<16x256xf32>
    tpu.vector_store %arg3[%c0_74, %c0_75], %61 {strides = array<i32>} : memref<16x256xf32, #tpu.memory_space<vmem>>, vector<16x256xf32>,
    %c0_76 = arith.constant 0 : index
    %c3840 = arith.constant 3840 : index
    %63 = vector.load %arg2[%c0_76, %c3840] : memref<16x4096xf32, #tpu.memory_space<vmem>>, vector<16x256xf32>
    %c0_77 = arith.constant 0 : index
    %c0_78 = arith.constant 0 : index
    %64 = vector.load %arg3[%c0_77, %c0_78] : memref<16x256xf32, #tpu.memory_space<vmem>>, vector<16x256xf32>
    %65 = arith.addf %64, %63 : vector<16x256xf32>
    %c0_79 = arith.constant 0 : index
    %c0_80 = arith.constant 0 : index
    %66 = vector.load %arg3[%c0_79, %c0_80] : memref<16x256xf32, #tpu.memory_space<vmem>>, vector<16x256xf32>
    tpu.vector_store %arg3[%c0_79, %c0_80], %65 {strides = array<i32>} : memref<16x256xf32, #tpu.memory_space<vmem>>, vector<16x256xf32>,
    return
  }
  func.func @transform_0(%arg0: i32, %arg1: i32) -> (i32, i32) {
    %c0_i32 = arith.constant 0 : i32
    return %arg0, %arg1 : i32, i32
  }
  func.func @transform_1(%arg0: i32, %arg1: i32) -> (i32, i32) {
    %c0_i32 = arith.constant 0 : i32
    %c0_i32_0 = arith.constant 0 : i32
    return %arg0, %c0_i32 : i32, i32
  }
}

</mosaic_0001>

<bundles_post_ra>
// kernel: tpu_custom_call.1
= control target key start
LH: loop header
LB: loop body
LE: loop exit
PB: predicated region body
PF: predicated region fallthrough
CT: control target
= control target key end

     0   :  { %6 = vsyncpa [#allocation3], 0  ;;  %s400_s0 = inlined_call_operand.hbm [shape: f32[16,4096], index: 0, kind: input, shape index: {}]   ;;  %s401_s1 = inlined_call_operand.hbm [shape: f32[16,256], index: 1, kind: output, shape index: {}]  }
   0x1   :  { %7 = vsyncpa [#allocation4], 0  ;;  %s358_s6 = smov [#allocation2]   ;;  %s310_s10 = scalar_lea.hbm %s400_s0, 8192 }
   0x2   :  { %s13_s7 = sshll.u32 %s358_s6, 4  ;;  %p311_p0 = scmp.ne.s32.totalorder %s400_s0, %s310_s10  ;;  %s14_s7 = int_to_ptr.vmem [resolvable:$true] %s13_s7 }
   0x3   :  { %p314_p1 = scmp.lt.u32.totalorder %s310_s10, %s400_s0 }
   0x5   :  { %p316_p2 = pnand %p314_p1, %p311_p0 }
   0x7   :  { %319 = shalt.err (!%p316_p2)
}
   0x8   :  { %s320_s15 = scalar_lea.vmem %s14_s7, 8192  ;;  %p325_p4 = scmp.lt.s32.totalorder %s14_s7, %s14_s7 }
   0x9   :  { %p321_p3 = scmp.ne.s32.totalorder %s14_s7, %s320_s15  ;;  %p326_p5 = scmp.lt.s32.totalorder %s320_s15, %s320_s15 }
   0xb   :  { %p327_p6 = por %p326_p5, %p325_p4 }
   0xd   :  { %p328_p7 = pnand %p327_p6, %p321_p3 }
   0xf   :  { %331 = shalt.err (!%p328_p7)
}
  0x10   :  { %s359_s16 = smov 4096   ;;  %s360_s17 = smov 256  }
  0x11   :  { %19 = dma.hbm_to_vmem [thread:$0]  %s400_s0, 8192, %s14_s7, [#allocation3], %s359_s16, %s359_s16, %s360_s17  }
  0x12   :  { %354 = dma.done.wait [#allocation3], 8192  }
  0x13   :  { %355 = vsyncadd [#allocation3], 4294959104  ;;  %v31_v0 = vld [vmem:[#allocation2] sm:$0xff]  ;;  %v32_v1 = vld [vmem:[#allocation2 + $0x8] sm:$0xff]  ;;  %s361_s0 = smov [#allocation5]  }
  0x14   :  { %v33_v2 = vld [vmem:[#allocation2 + $0x100] sm:$0xff]  ;;  %v34_v3 = vld [vmem:[#allocation2 + $0x108] sm:$0xff]  ;;  %v47_v4 = vld [vmem:[#allocation2 + $0x10] sm:$0xff]  ;;  %s292_s20 = sshll.u32 %s361_s0, 4  ;;  %s293_s20 = int_to_ptr.vmem [resolvable:$true] %s292_s20 }
  0x15   :  { %v48_v5 = vld [vmem:[#allocation2 + $0x18] sm:$0xff]  ;;  %v49_v6 = vld [vmem:[#allocation2 + $0x110] sm:$0xff]  ;;  %v63_v8 = vld [vmem:[#allocation2 + $0x20] sm:$0xff]  ;;  %v55_v9 = vadd.f32 %v47_v4, %v31_v0  ;;  %s332_s21 = scalar_lea.vmem %s293_s20, 512  ;;  %p337_p9 = scmp.lt.s32.totalorder %s293_s20, %s293_s20 }
  0x16   :  { %v50_v7 = vld [vmem:[#allocation2 + $0x118] sm:$0xff]  ;;  %v56_v10 = vadd.f32 %v48_v5, %v32_v1  ;;  %v57_v11 = vadd.f32 %v49_v6, %v33_v2  ;;  %v64_v12 = vld [vmem:[#allocation2 + $0x28] sm:$0xff]  ;;  %v65_v13 = vld [vmem:[#allocation2 + $0x120] sm:$0xff]  ;;  %p333_p8 = scmp.ne.s32.totalorder %s293_s20, %s332_s21  ;;  %p338_p10 = scmp.lt.s32.totalorder %s332_s21, %s332_s21 }
  0x17   :  { %v66_v14 = vld [vmem:[#allocation2 + $0x128] sm:$0xff]  ;;  %v58_v15 = vadd.f32 %v50_v7, %v34_v3  ;;  %v79_v16 = vld [vmem:[#allocation2 + $0x30] sm:$0xff]  ;;  %v80_v17 = vld [vmem:[#allocation2 + $0x38] sm:$0xff]  ;;  %v71_v19 = vadd.f32 %v63_v8, %v55_v9 }
  0x18   :  { %v81_v18 = vld [vmem:[#allocation2 + $0x130] sm:$0xff]  ;;  %v72_v20 = vadd.f32 %v64_v12, %v56_v10  ;;  %v73_v21 = vadd.f32 %v65_v13, %v57_v11  ;;  %v82_v22 = vld [vmem:[#allocation2 + $0x138] sm:$0xff]  ;;  %v95_v24 = vld [vmem:[#allocation2 + $0x40] sm:$0xff]  ;;  %p339_p11 = por %p338_p10, %p337_p9 }
  0x19   :  { %v74_v23 = vadd.f32 %v66_v14, %v58_v15  ;;  %v96_v25 = vld [vmem:[#allocation2 + $0x48] sm:$0xff]  ;;  %v97_v26 = vld [vmem:[#allocation2 + $0x140] sm:$0xff]  ;;  %v87_v27 = vadd.f32 %v79_v16, %v71_v19  ;;  %v111_v32 = vld [vmem:[#allocation2 + $0x50] sm:$0xff] }
  0x1a   :  { %v88_v28 = vadd.f32 %v80_v17, %v72_v20  ;;  %v89_v29 = vadd.f32 %v81_v18, %v73_v21  ;;  %v98_v30 = vld [vmem:[#allocation2 + $0x148] sm:$0xff]  ;;  %v112_v33 = vld [vmem:[#allocation2 + $0x58] sm:$0xff]  ;;  %v113_v34 = vld [vmem:[#allocation2 + $0x150] sm:$0xff]  ;;  %p340_p12 = pnand %p339_p11, %p333_p8 }
  0x1b   :  { %v90_v31 = vadd.f32 %v82_v22, %v74_v23  ;;  %v103_v35 = vadd.f32 %v95_v24, %v87_v27  ;;  %v114_v38 = vld [vmem:[#allocation2 + $0x158] sm:$0xff]  ;;  %v127_v40 = vld [vmem:[#allocation2 + $0x60] sm:$0xff]  ;;  %v128_v41 = vld [vmem:[#allocation2 + $0x68] sm:$0xff] }
  0x1c   :  { %v104_v36 = vadd.f32 %v96_v25, %v88_v28  ;;  %v105_v37 = vadd.f32 %v97_v26, %v89_v29  ;;  %v129_v42 = vld [vmem:[#allocation2 + $0x160] sm:$0xff]  ;;  %v130_v46 = vld [vmem:[#allocation2 + $0x168] sm:$0xff]  ;;  %v143_v48 = vld [vmem:[#allocation2 + $0x70] sm:$0xff] }
  0x1d   :  { %v106_v39 = vadd.f32 %v98_v30, %v90_v31  ;;  %v119_v43 = vadd.f32 %v111_v32, %v103_v35  ;;  %v144_v49 = vld [vmem:[#allocation2 + $0x78] sm:$0xff]  ;;  %v145_v50 = vld [vmem:[#allocation2 + $0x170] sm:$0xff]  ;;  %v159_v56 = vld [vmem:[#allocation2 + $0x80] sm:$0xff] }
  0x1e   :  { %v120_v44 = vadd.f32 %v112_v33, %v104_v36  ;;  %v121_v45 = vadd.f32 %v113_v34, %v105_v37  ;;  %v146_v54 = vld [vmem:[#allocation2 + $0x178] sm:$0xff]  ;;  %v160_v57 = vld [vmem:[#allocation2 + $0x88] sm:$0xff]  ;;  %v161_v58 = vld [vmem:[#allocation2 + $0x180] sm:$0xff] }
  0x1f   :  { %v122_v47 = vadd.f32 %v114_v38, %v106_v39  ;;  %v135_v51 = vadd.f32 %v127_v40, %v119_v43  ;;  %v162_v62 = vld [vmem:[#allocation2 + $0x188] sm:$0xff]  ;;  %v175_v0 = vld [vmem:[#allocation2 + $0x90] sm:$0xff]  ;;  %v176_v1 = vld [vmem:[#allocation2 + $0x98] sm:$0xff] }
  0x20   :  { %v136_v52 = vadd.f32 %v128_v41, %v120_v44  ;;  %v137_v53 = vadd.f32 %v129_v42, %v121_v45  ;;  %v177_v2 = vld [vmem:[#allocation2 + $0x190] sm:$0xff]  ;;  %v178_v6 = vld [vmem:[#allocation2 + $0x198] sm:$0xff]  ;;  %v191_v8 = vld [vmem:[#allocation2 + $0xa0] sm:$0xff] }
  0x21   :  { %v138_v55 = vadd.f32 %v130_v46, %v122_v47  ;;  %v151_v59 = vadd.f32 %v143_v48, %v135_v51  ;;  %v192_v9 = vld [vmem:[#allocation2 + $0xa8] sm:$0xff]  ;;  %v193_v10 = vld [vmem:[#allocation2 + $0x1a0] sm:$0xff]  ;;  %v207_v16 = vld [vmem:[#allocation2 + $0xb0] sm:$0xff] }
  0x22   :  { %v152_v60 = vadd.f32 %v144_v49, %v136_v52  ;;  %v153_v61 = vadd.f32 %v145_v50, %v137_v53  ;;  %v194_v14 = vld [vmem:[#allocation2 + $0x1a8] sm:$0xff]  ;;  %v208_v17 = vld [vmem:[#allocation2 + $0xb8] sm:$0xff]  ;;  %v209_v18 = vld [vmem:[#allocation2 + $0x1b0] sm:$0xff] }
  0x23   :  { %v154_v63 = vadd.f32 %v146_v54, %v138_v55  ;;  %v167_v3 = vadd.f32 %v159_v56, %v151_v59  ;;  %v210_v22 = vld [vmem:[#allocation2 + $0x1b8] sm:$0xff]  ;;  %v223_v24 = vld [vmem:[#allocation2 + $0xc0] sm:$0xff]  ;;  %v224_v25 = vld [vmem:[#allocation2 + $0xc8] sm:$0xff] }
  0x24   :  { %v168_v4 = vadd.f32 %v160_v57, %v152_v60  ;;  %v169_v5 = vadd.f32 %v161_v58, %v153_v61  ;;  %v225_v26 = vld [vmem:[#allocation2 + $0x1c0] sm:$0xff]  ;;  %v226_v30 = vld [vmem:[#allocation2 + $0x1c8] sm:$0xff]  ;;  %v239_v32 = vld [vmem:[#allocation2 + $0xd0] sm:$0xff] }
  0x25   :  { %v170_v7 = vadd.f32 %v162_v62, %v154_v63  ;;  %v183_v11 = vadd.f32 %v175_v0, %v167_v3  ;;  %v240_v33 = vld [vmem:[#allocation2 + $0xd8] sm:$0xff]  ;;  %v241_v34 = vld [vmem:[#allocation2 + $0x1d0] sm:$0xff]  ;;  %v255_v40 = vld [vmem:[#allocation2 + $0xe0] sm:$0xff] }
  0x26   :  { %v184_v12 = vadd.f32 %v176_v1, %v168_v4  ;;  %v185_v13 = vadd.f32 %v177_v2, %v169_v5  ;;  %v242_v38 = vld [vmem:[#allocation2 + $0x1d8] sm:$0xff]  ;;  %v256_v41 = vld [vmem:[#allocation2 + $0xe8] sm:$0xff]  ;;  %v257_v42 = vld [vmem:[#allocation2 + $0x1e0] sm:$0xff] }
  0x27   :  { %v186_v15 = vadd.f32 %v178_v6, %v170_v7  ;;  %v199_v19 = vadd.f32 %v191_v8, %v183_v11  ;;  %v258_v46 = vld [vmem:[#allocation2 + $0x1e8] sm:$0xff]  ;;  %v271_v48 = vld [vmem:[#allocation2 + $0xf0] sm:$0xff]  ;;  %v272_v49 = vld [vmem:[#allocation2 + $0xf8] sm:$0xff] }
  0x28   :  { %v200_v20 = vadd.f32 %v192_v9, %v184_v12  ;;  %v201_v21 = vadd.f32 %v193_v10, %v185_v13  ;;  %v273_v50 = vld [vmem:[#allocation2 + $0x1f0] sm:$0xff]  ;;  %v274_v54 = vld [vmem:[#allocation2 + $0x1f8] sm:$0xff] }
  0x29   :  { %v202_v23 = vadd.f32 %v194_v14, %v186_v15  ;;  %v215_v27 = vadd.f32 %v207_v16, %v199_v19 }
  0x2a   :  { %v216_v28 = vadd.f32 %v208_v17, %v200_v20  ;;  %v217_v29 = vadd.f32 %v209_v18, %v201_v21 }
  0x2b   :  { %v218_v31 = vadd.f32 %v210_v22, %v202_v23  ;;  %v231_v35 = vadd.f32 %v223_v24, %v215_v27 }
  0x2c   :  { %v232_v36 = vadd.f32 %v224_v25, %v216_v28  ;;  %v233_v37 = vadd.f32 %v225_v26, %v217_v29 }
  0x2d   :  { %v234_v39 = vadd.f32 %v226_v30, %v218_v31  ;;  %v247_v43 = vadd.f32 %v239_v32, %v231_v35 }
  0x2e   :  { %v248_v44 = vadd.f32 %v240_v33, %v232_v36  ;;  %v249_v45 = vadd.f32 %v241_v34, %v233_v37 }
  0x2f   :  { %v250_v47 = vadd.f32 %v242_v38, %v234_v39  ;;  %v263_v51 = vadd.f32 %v255_v40, %v247_v43 }
  0x30   :  { %v264_v52 = vadd.f32 %v256_v41, %v248_v44  ;;  %v265_v53 = vadd.f32 %v257_v42, %v249_v45 }
  0x31   :  { %v266_v55 = vadd.f32 %v258_v46, %v250_v47  ;;  %v279_v56 = vadd.f32 %v271_v48, %v263_v51 }
  0x32   :  { %v280_v57 = vadd.f32 %v272_v49, %v264_v52  ;;  %v281_v58 = vadd.f32 %v273_v50, %v265_v53 }
  0x33   :  { %v282_v59 = vadd.f32 %v274_v54, %v266_v55  ;;  %283 = vst [vmem:[#allocation5] sm:$0xff] %v279_v56 }
  0x34   :  { %284 = vst [vmem:[#allocation5 + $0x8] sm:$0xff] %v280_v57  ;;  %285 = vst [vmem:[#allocation5 + $0x10] sm:$0xff] %v281_v58 }
  0x35   :  { %286 = vst [vmem:[#allocation5 + $0x18] sm:$0xff] %v282_v59 }
  0x36   :  { %343 = shalt.err (!%p340_p12)
}
  0x37   :  { %s344_s24 = scalar_lea.hbm %s401_s1, 512 }
  0x38   :  { %p345_p13 = scmp.ne.s32.totalorder %s401_s1, %s344_s24  ;;  %p348_p0 = scmp.lt.u32.totalorder %s344_s24, %s401_s1 }
  0x3a   :  { %p350_p1 = pnand %p348_p0, %p345_p13 }
  0x3c   :  { %353 = shalt.err (!%p350_p1)
}
  0x3d   :  { %s362_s29 = smov 16  }
  0x3e   :  { %298 = dma.vmem_to_hbm [thread:$0]  %s293_s20, 512, %s401_s1, [#allocation4], %s360_s17, %s360_s17, %s362_s29  }
  0x3f   :  { %356 = dma.done.wait [#allocation4], 512  }
  0x40   :  { %357 = vsyncadd [#allocation4], 4294966784 }
  0x41   :  { %302 = vsyncpa [#allocation3], 1 }
  0x42   :  { %303 = vsyncpa [#allocation4], 1 }

</bundles_post_ra>
